<compile_context>
chip_gen: v7x
topology: tpu7x:2x2x1
jax: 0.10.0
libtpu: 0.0.40
codegen_flags: <defaults>
</compile_context>

<pallas_src>
import jax
import jax.numpy as jnp
from jax.experimental import pallas as pl
from jax.experimental.pallas import tpu as pltpu


def _linear_hardswish_kernel(x_ref, w_ref, b_ref, o_ref):
    # x_ref: (TM, pack*K), w_ref: (pack*K, pack*N), b_ref: (1, pack*N),
    # o_ref: (TM, pack*N).  Rows in the ragged last block may be garbage; their
    # stores are masked by Pallas, so computing hardswish on them is harmless.
    y = jnp.dot(x_ref[...], w_ref[...], preferred_element_type=jnp.float32)
    y = y + b_ref[...]
    # hardswish: y * clamp(y + 3, 0, 6) / 6
    o_ref[...] = (y * jnp.clip(y + 3.0, 0.0, 6.0) * (1.0 / 6.0)).astype(o_ref.dtype)


def _round_up(a, m):
    return ((a + m - 1) // m) * m


def _hardswish(y):
    return y * jnp.clip(y + 3.0, 0.0, 6.0) / 6.0


def linear_hardswish(x, w, b, *, rows_per_step=16384, min_grid_steps=8,
                     small_m_threshold=4096, force_pallas=False):
    """Fused y = hardswish(x @ w + b) over the last axis of x.

    x: (..., K) f32, w: (K, N) f32, b: (N,) f32 -> (..., N) f32.
    """
    K = x.shape[-1]
    N = w.shape[1]
    lead = x.shape[:-1]

    x2d = x.reshape(-1, K).astype(jnp.float32)
    M = x2d.shape[0]

    # Small-problem fast path: packing/launch overhead dominates; let XLA fuse.
    if M < small_m_threshold and not force_pallas:
        y = x2d @ w + b
        return _hardswish(y).reshape(*lead, N)

    # Row packing: view `pack` consecutive rows as one kernel row so the input
    # block is a full 128-lane f32 vreg and the output block is lane-dense
    # (multiple of 128 -> unmasked vst).  pack divides M exactly, so there is
    # never an input pad nor an output slice (each would be an extra full HBM
    # pass around a memory-bound kernel).
    if M % 4 == 0:
        pack = 4
    elif M % 2 == 0:
        pack = 2
    else:
        pack = 1

    Mp = M // pack
    Kp = pack * K
    Np = pack * N

    x_packed = x2d.reshape(Mp, Kp)                        # contiguous view

    # Block-diagonal weight diag(W,...,W) and tiled bias so every packed row
    # sees the same affine map.  <= 128 KiB; folds to a constant under jit
    # when w/b are static.
    w_packed = jnp.kron(jnp.eye(pack, dtype=w.dtype), w)  # (Kp, Np)
    b_packed = jnp.tile(b, pack).reshape(1, Np)           # (1, Np)

    # Tile size: target ~rows_per_step original rows per grid step
    # (~12 MiB double-buffered x+out at pack=4), but keep >= min_grid_steps
    # grid steps so v7x's two TensorCores both get work on the "parallel" axis.
    tm_target = max(8, (rows_per_step // pack) // 8 * 8)
    tm_cap = _round_up(max(1, pl.cdiv(Mp, min_grid_steps)), 8)
    tm = max(8, min(tm_target, tm_cap))
    grid = (pl.cdiv(Mp, tm),)                             # ragged last block ok

    bytes_accessed = (M * K + Kp * Np + Np + M * N) * 4
    cost = pl.CostEstimate(flops=2 * M * K * N,
                           transcendentals=0,
                           bytes_accessed=bytes_accessed)

    out = pl.pallas_call(
        _linear_hardswish_kernel,
        out_shape=jax.ShapeDtypeStruct((Mp, Np), jnp.float32),
        grid=grid,
        in_specs=[
            pl.BlockSpec((tm, Kp), lambda i: (i, 0)),     # streamed x tiles
            pl.BlockSpec((Kp, Np), lambda i: (0, 0)),     # resident weight
            pl.BlockSpec((1, Np), lambda i: (0, 0)),      # resident bias
        ],
        out_specs=pl.BlockSpec((tm, Np), lambda i: (i, 0)),
        compiler_params=pltpu.CompilerParams(
            dimension_semantics=("parallel",),
            vmem_limit_bytes=32 * 1024 * 1024),
        cost_estimate=cost,
    )(x_packed, w_packed, b_packed)

    # Undo the row packing: pure row-major view, no copy, no [:M] slice
    # (Mp * pack == M exactly).
    return out.reshape(*lead, N)


if __name__ == "__main__":
    key = jax.random.PRNGKey(0)
    kx, kw, kb, kx2 = jax.random.split(key, 4)

    # Spec input torch.randn(2, 32, 3, 3), interpreted channels-last so the
    # Linear(32, 64) applies over the size-32 feature axis.
    B, H, W_, K, N = 2, 3, 3, 32, 64
    x = jax.random.normal(kx, (B, H, W_, K), dtype=jnp.float32)

    # Deterministic params (nn.Linear-style uniform(-1/sqrt(K), 1/sqrt(K))).
    bound = 1.0 / jnp.sqrt(jnp.float32(K))
    w = jax.random.uniform(kw, (K, N), minval=-bound, maxval=bound,
                           dtype=jnp.float32)
    b = jax.random.uniform(kb, (N,), minval=-bound, maxval=bound,
                           dtype=jnp.float32)

    def reference(xi):
        y = xi.reshape(-1, K) @ w + b
        return (y * jnp.clip(y + 3.0, 0.0, 6.0) / 6.0).reshape(*xi.shape[:-1], N)

    # 1) Spec-sized input forced through the Pallas path (M=18 -> pack=2,
    #    ragged last grid block) to make sure the kernel compiles and runs.
    out = jax.block_until_ready(linear_hardswish(x, w, b, force_pallas=True))
    assert out.shape == (B, H, W_, N)
    assert jnp.allclose(out, reference(x), atol=1e-5, rtol=1e-5)

    # 2) Larger input exercising pack=4 + multi-step grid (M=512).
    x_big = jax.random.normal(kx2, (2, 16, 16, K), dtype=jnp.float32)
    out_big = jax.block_until_ready(
        linear_hardswish(x_big, w, b, force_pallas=True))
    assert jnp.allclose(out_big, reference(x_big), atol=1e-5, rtol=1e-5)

    # 3) Default small-M fast path (plain XLA) still matches.
    out_small = jax.block_until_ready(linear_hardswish(x, w, b))
    assert jnp.allclose(out_small, reference(x), atol=1e-5, rtol=1e-5)

    print("KERNEL_OK")
</pallas_src>

<mosaic_0001>
module attributes {stable_mosaic.version = 11 : i64} {
  func.func @_linear_hardswish_kernel(%arg0: i32, %arg1: memref<8x64xf32, #tpu.memory_space<vmem>>, %arg2: memref<64x128xf32, #tpu.memory_space<vmem>>, %arg3: memref<1x128xf32, #tpu.memory_space<vmem>>, %arg4: memref<8x128xf32, #tpu.memory_space<vmem>>) attributes {dimension_semantics = [#tpu.dimension_semantics<parallel>], iteration_bounds = array<i64: 2>, scalar_prefetch = 0 : i64, scratch_operands = 0 : i64, tpu.core_type = #tpu.core_type<tc>, window_params = [{transform_indices = @transform_0, window_bounds = array<i64: 8, 64>}, {pipeline_mode = #tpu.pipeline_mode<synchronous>, transform_indices = @transform_1, window_bounds = array<i64: 64, 128>}, {pipeline_mode = #tpu.pipeline_mode<synchronous>, transform_indices = @transform_2, window_bounds = array<i64: 1, 128>}, {transform_indices = @transform_3, window_bounds = array<i64: 8, 128>}]} {
    %c0 = arith.constant 0 : index
    %c0_0 = arith.constant 0 : index
    %0 = vector.load %arg1[%c0, %c0_0] : memref<8x64xf32, #tpu.memory_space<vmem>>, vector<8x64xf32>
    %c0_1 = arith.constant 0 : index
    %c0_2 = arith.constant 0 : index
    %1 = vector.load %arg2[%c0_1, %c0_2] : memref<64x128xf32, #tpu.memory_space<vmem>>, vector<64x128xf32>
    %cst = arith.constant dense<0.000000e+00> : vector<8x128xf32>
    %2 = tpu.matmul %0, %1, %cst {dimension_numbers = #tpu.dot_dimension_numbers<[1], [0], [0], [1], [0, 0, 1, 1], [], []>} : vector<8x64xf32>, vector<64x128xf32>, vector<8x128xf32> -> vector<8x128xf32>
    %c0_3 = arith.constant 0 : index
    %c0_4 = arith.constant 0 : index
    %3 = vector.load %arg3[%c0_3, %c0_4] : memref<1x128xf32, #tpu.memory_space<vmem>>, vector<1x128xf32>
    %4 = vector.broadcast %3 : vector<1x128xf32> to vector<8x128xf32>
    %5 = arith.addf %2, %4 : vector<8x128xf32>
    %cst_5 = arith.constant 3.000000e+00 : f32
    %6 = vector.broadcast %cst_5 : f32 to vector<8x128xf32>
    %7 = arith.addf %5, %6 : vector<8x128xf32>
    %cst_6 = arith.constant 0.000000e+00 : f32
    %cst_7 = arith.constant 6.000000e+00 : f32
    %8 = vector.broadcast %cst_6 : f32 to vector<8x128xf32>
    %9 = arith.maximumf %8, %7 : vector<8x128xf32>
    %10 = vector.broadcast %cst_7 : f32 to vector<8x128xf32>
    %11 = arith.minimumf %10, %9 : vector<8x128xf32>
    %12 = arith.mulf %5, %11 : vector<8x128xf32>
    %cst_8 = arith.constant 0.166666672 : f32
    %13 = vector.broadcast %cst_8 : f32 to vector<8x128xf32>
    %14 = arith.mulf %12, %13 : vector<8x128xf32>
    %c0_9 = arith.constant 0 : index
    %c0_10 = arith.constant 0 : index
    %15 = vector.load %arg4[%c0_9, %c0_10] : memref<8x128xf32, #tpu.memory_space<vmem>>, vector<8x128xf32>
    tpu.vector_store %arg4[%c0_9, %c0_10], %14 {strides = array<i32>} : memref<8x128xf32, #tpu.memory_space<vmem>>, vector<8x128xf32>,
    return
  }
  func.func @transform_0(%arg0: i32) -> (i32, i32) {
    %c0_i32 = arith.constant 0 : i32
    %c0_i32_0 = arith.constant 0 : i32
    return %arg0, %c0_i32 : i32, i32
  }
  func.func @transform_1(%arg0: i32) -> (i32, i32) {
    %c0_i32 = arith.constant 0 : i32
    %c0_i32_0 = arith.constant 0 : i32
    %c0_i32_1 = arith.constant 0 : i32
    return %c0_i32, %c0_i32_0 : i32, i32
  }
  func.func @transform_2(%arg0: i32) -> (i32, i32) {
    %c0_i32 = arith.constant 0 : i32
    %c0_i32_0 = arith.constant 0 : i32
    %c0_i32_1 = arith.constant 0 : i32
    return %c0_i32, %c0_i32_0 : i32, i32
  }
  func.func @transform_3(%arg0: i32) -> (i32, i32) {
    %c0_i32 = arith.constant 0 : i32
    %c0_i32_0 = arith.constant 0 : i32
    return %arg0, %c0_i32 : i32, i32
  }
}

</mosaic_0001>

<bundles_post_ra>
// kernel: tpu_custom_call.1
= control target key start
LH: loop header
LB: loop body
LE: loop exit
PB: predicated region body
PF: predicated region fallthrough
CT: control target
= control target key end

     0   :  { %8 = vsyncpa [#allocation3], 0  ;;  %s870_s0 = inlined_call_operand.hbm [shape: f32[9,64], index: 0, kind: input, shape index: {}]   ;;  %s871_s1 = inlined_call_operand.hbm [shape: f32[64,128], index: 1, kind: input, shape index: {}]   ;;  %s872_s2 = inlined_call_operand.vmem [shape: f32[1,128], index: 2, kind: input, shape index: {}]   ;;  %s873_s3 = inlined_call_operand.hbm [shape: f32[9,128], index: 3, kind: output, shape index: {}]  }
   0x1   :  { %10 = vsyncpa [#allocation3 + $0x1], 0 }
   0x2   :  { %11 = vsyncpa [#allocation6], 0 }
   0x3   :  { %12 = vsyncpa [#allocation4], 0 }
   0x4   :  { %14 = vsyncpa [#allocation4 + $0x1], 0  ;;  %s667_s12 = smov 0   ;;  %s669_s13 = smov 0  }
   0x5   :  { %s671_s14 = smov 0   ;;  %s673_s15 = smov 0  }
   0x6 LB: > { %s688_s16 = sadd.s32 4294967295, %s637_s15   ;;  %s391_s17 = sadd.s32 4294967294, %s637_s15   ;;  %s637_s15 = sphi %s673_s15, %s893_s15   ;;  %s633_s14 = sphi %s671_s14, %s892_s14   ;;  %s629_s13 = sphi %s669_s13, %s891_s13   ;;  %s625_s12 = sphi %s667_s12, %s890_s12  }
   0x7   : > { %p40_p0 = scmp.ne.s32.totalorder %s629_s13, %s625_s12  ;;  %p874_p1 = scmp.eq.s32.totalorder %s688_s16, 0 }
   0x8   : > { %p112_p3 = scmp.eq.s32.totalorder %s391_s17, 1  ;;  %p392_p5 = scmp.ge.s32.totalorder %s637_s15, 1 }
   0x9   : > { %p697_p4 = por %p874_p1, %p40_p0  ;;  %p119_p7 = scmp.lt.s32.totalorder %s637_s15, 3 }
   0xa   : > { %p702_p6 = por %p112_p3, %p40_p0  ;;  %s639_s21 = smov [#allocation5]  }
   0xb   : > { %s877_s18 = scalar_select %p697_p4, 1, 0 }
   0xc   : > { %s878_s19 = scalar_select %p702_p6, 1, 0 }
   0xd   : > { %p707_p8 = pnand %p392_p5, %p119_p7  ;;  %s131_s22 = sshll.u32 %s639_s21, 4  ;;  %s711_s22 = int_to_ptr.vmem [resolvable:$true] %s131_s22 }
   0xe   : > { %s723_s24 = sadd.s32 1, %s637_s15   ;;  %s27_s25 = sadd.s32 1, %s633_s14 }
   0xf   : > { %s879_s20 = scalar_select %p707_p8, 1, 0 }
  0x10   : > { %p455_p9 = pneg %p707_p8  ;;  %s24_s26 = ssub.s32 %s637_s15, %s723_s24 }
  0x11   : > { %s509_s29 = scalar_lea.hbm %s871_s1, 1024 }
  0x12   : > { %p718_p11 = pnand %p455_p9, %p874_p1  ;;  %p510_p12 = scmp.ne.s32.totalorder %s871_s1, %s509_s29 }
  0x13   : > { %p516_p5 = scmp.lt.u32.totalorder %s509_s29, %s871_s1 }
  0x14   : > { %p511_p13 = pneg %p718_p11 }
  0x16   : > { %p512_p0 = pnand %p511_p13, %p510_p12 }
  0x18   : > { %p513_p3 = pneg %p512_p0 }
  0x1a   : > { %p518_p7 = pnand %p516_p5, %p513_p3 }
  0x1c   : > { %521 = shalt.err (!%p518_p7)
}
  0x1d   : > { %s522_s7 = scalar_lea.vmem %s711_s22, 1024  ;;  %p530_p2 = scmp.lt.s32.totalorder %s711_s22, %s711_s22 }
  0x1e   : > { %p523_p9 = scmp.ne.s32.totalorder %s711_s22, %s522_s7  ;;  %p531_p6 = scmp.lt.s32.totalorder %s522_s7, %s522_s7 }
  0x20   : > { %p525_p10 = pnand %p523_p9, %p511_p13  ;;  %p532_p4 = por %p531_p6, %p530_p2 }
  0x22   : > { %p526_p1 = pneg %p525_p10 }
  0x24   : > { %p533_p8 = pnand %p532_p4, %p526_p1 }
  0x26   : > { %536 = shalt.err (!%p533_p8)
}
  0x27   : > { %s640_s8 = smov 128   ;;  %s641_s9 = smov 8  }
  0x28   : > { %458 = dma.hbm_to_vmem [thread:$0]  (!%p718_p11), %s871_s1, 1024, %s711_s22, [#allocation6], %s640_s8, %s640_s8, %s641_s9  }
  0x29   : > { %p25_p2 = scmp.eq.s32.totalorder %s24_s26, 0  ;;  %p34_p1 = scmp.ne.s32.totalorder %s633_s14, %s629_s13 }
  0x2a   : > { %p35_p4 = scmp.eq.s32.totalorder %s637_s15, 0  ;;  %p468_p6 = scmp.lt.s32.totalorder %s637_s15, 2 }
  0x2b   : > { %s754_s17 = scalar_select %p25_p2, %s633_s14, %s27_s25  }
  0x2c   : > { %p36_p8 = por %p35_p4, %p34_p1  ;;  %p881_p10 = scmp.eq.s32.totalorder %s688_s16, 1 }
  0x2d   : > { %s148_s27 = sand.u32 1, %s633_s14   ;;  %s396_s28 = sshll.u32 %s637_s15, 7 }
  0x2e   : > { %p758_p12 = por %p881_p10, %p34_p1  ;;  %s395_s29 = sshll.u32 %s148_s27, 3 }
  0x2f   : > { %s767_s4 = scalar_lea.hbm %s870_s0, %s396_s28  ;;  %s152_s22 = scalar_lea.vmem [#allocation2], %s395_s29 }
  0x30   : > { %s159_s25 = sshll.u32 %s152_s22, 4  ;;  %p769_p11 = pnand %p468_p6, %p36_p8  ;;  %s773_s25 = int_to_ptr.vmem [resolvable:$true] %s159_s25 }
  0x31   : > { %s149_s5 = scalar_lea.sflag [#allocation3], %s148_s27  ;;  %s537_s6 = scalar_lea.hbm %s767_s4, 128 }
  0x32   : > { %p538_p13 = scmp.ne.s32.totalorder %s767_s4, %s537_s6  ;;  %p539_p0 = pneg %p769_p11 }
  0x33   : > { %s542_s9 = scalar_lea.hbm %s870_s0, 256  ;;  %p543_p7 = scmp.lt.u32.totalorder %s767_s4, %s870_s0 }
  0x34   : > { %p540_p3 = pnand %p539_p0, %p538_p13  ;;  %p544_p9 = scmp.lt.u32.totalorder %s542_s9, %s537_s6 }
  0x35   : > { %p546_p1 = scmp.lt.u32.totalorder %s537_s6, %s767_s4 }
  0x36   : > { %p541_p5 = pneg %p540_p3  ;;  %p545_p2 = por %p544_p9, %p543_p7 }
  0x38   : > { %p547_p4 = por %p546_p1, %p545_p2 }
  0x3a   : > { %p548_p6 = pnand %p547_p4, %p541_p5 }
  0x3c   : > { %551 = shalt.err (!%p548_p6)
}
  0x3d   : > { %s552_s27 = scalar_lea.vmem %s773_s25, 128  ;;  %s642_s28 = smov [#allocation2]  }
  0x3e   : > { %p553_p8 = scmp.ne.s32.totalorder %s773_s25, %s552_s27  ;;  %s557_s29 = sshll.u32 %s642_s28, 4  ;;  %s558_s29 = int_to_ptr.vmem [resolvable:$false] %s557_s29 }
  0x3f   : > { %s559_s23 = scalar_lea.vmem %s558_s29, 256  ;;  %p560_p3 = scmp.lt.s32.totalorder %s773_s25, %s558_s29 }
  0x40   : > { %p555_p10 = pnand %p553_p8, %p539_p0  ;;  %p561_p7 = scmp.lt.s32.totalorder %s559_s23, %s552_s27 }
  0x42   : > { %p556_p13 = pneg %p555_p10  ;;  %p562_p9 = por %p561_p7, %p560_p3 }
  0x44   : > { %p563_p2 = pnand %p562_p9, %p556_p13 }
  0x46   : > { %566 = shalt.err (!%p563_p2)
}
  0x47   : > { %462 = dma.hbm_to_vmem [thread:$0]  (!%p769_p11), %s767_s4, 128, %s773_s25, %s149_s5  }
  0x48   : > { %p884_p5 = scmp.ne.s32.totalorder %s879_s20, 0 }
  0x49   : > { %s803_s30 = sand.u32 (!%p884_p5), 1, %s629_s13   ;;  %p885_p0 = scmp.ne.s32.totalorder (!%p884_p5), %s877_s18, 0 }
  0x4a   : > { %168 = sbr.rel (%p884_p5) target bundleno = 341 (0x155), region = 32  ;;  %s398_s22 = sshll.u32 (!%p884_p5), %s803_s30, 3 }
  0x4b   : > { %s171_s6 = scalar_lea.sflag (!%p884_p5), [#allocation3], %s803_s30  ;;  %s174_s7 = scalar_lea.vmem (!%p884_p5), [#allocation2], %s398_s22 }
  0x51   : > { %612 = dma.done.wait (%p885_p0), %s171_s6, 128  }
  0x52   : > { %614 = vsyncadd (%p885_p0), %s171_s6, 4294967168  ;;  %p886_p11 = scmp.eq.s32.totalorder %s688_s16, 0 }
  0x54   : > { %616 = dma.done.wait (%p886_p11), [#allocation6], 1024   ;;  %p887_p1 = pmov %p886_p11 }
  0x55   : > { %v643_v0 = vmov 0.0|0.0   ;;  %vm644_vm0 = vmmov 0   ;;  %v645_v1 = vmov 0.0   ;;  %v202_v2 = vld [vmem:[#allocation5] sm:$0xff]  ;;  %v203_v3 = vld [vmem:[#allocation5 + $0x8] sm:$0xff]  ;;  %v204_v4 = vld [vmem:[#allocation5 + $0x10] sm:$0xff] }
  0x56   : > { %618 = vsyncadd (%p887_p1), [#allocation6], 4294966272  ;;  %435 = vmatprep.subr.bf16.mxu0 %v643_v0  ;;  %432 = vmatprep.mubr.msk.f32.mxu0 %vm644_vm0, %v645_v1  ;;  %v436_v5 = vpack.c.bf16 %v203_v3, %v202_v2  ;;  %v205_v6 = vld [vmem:[#allocation5 + $0x18] sm:$0xff]  ;;  %v206_v8 = vld [vmem:[#allocation5 + $0x20] sm:$0xff]  ;;  %vm217_vm1 = vcmask 523264   ;;  %s404_s4 = sshll.u32 %s688_s16, 7 }
  0x57   : > { %v439_v7 = vpack.c.bf16 %v205_v6, %v204_v4  ;;  %v207_v9 = vld [vmem:[#allocation5 + $0x28] sm:$0xff]  ;;  %v208_v11 = vld [vmem:[#allocation5 + $0x30] sm:$0xff]  ;;  %v209_v12 = vld [vmem:[#allocation5 + $0x38] sm:$0xff]  ;;  %s200_s25 = scalar_lea.vmem [#allocation7], %s398_s22  ;;  %s826_s9 = scalar_lea.hbm %s873_s3, %s404_s4 }
  0x58   : > { %437 = vmatpush3.bf16.msra.mxu0 %v436_v5  ;;  %v442_v10 = vpack.c.bf16 %v207_v9, %v206_v8  ;;  %v445_v13 = vpack.c.bf16 %v209_v12, %v208_v11  ;;  %v201_v14 = vld [vmem:[%s174_s7] sm:$0xff]  ;;  %s311_s26 = sshll.u32 %s200_s25, 4  ;;  %s298_s10 = scalar_lea.sflag [#allocation4], %s803_s30  ;;  %s828_s26 = int_to_ptr.vmem [resolvable:$true] %s311_s26 }
  0x59   : > { %438 = vmatprep.subr.bf16.mxu0 %v643_v0  ;;  %v401_v15 = vld [vmem:[%s872_s2] ss:$0 sm:$0xff]  ;;  %s567_s11 = scalar_lea.vmem %s828_s26, 128  ;;  %s646_s16 = smov [#allocation7]  }
  0x5a   : > { %p568_p4 = scmp.ne.s32.totalorder %s828_s26, %s567_s11  ;;  %s571_s27 = sshll.u32 %s646_s16, 4  ;;  %s572_s27 = int_to_ptr.vmem [resolvable:$false] %s571_s27 }
  0x5b   : > { %s573_s28 = scalar_lea.vmem %s572_s27, 256  ;;  %p574_p10 = scmp.lt.s32.totalorder %s828_s26, %s572_s27 }
  0x5c   : > { %440 = vmatpush3.bf16.msra.mxu0 %v439_v7  ;;  %p569_p6 = pnand %p568_p4, %p758_p12  ;;  %p575_p13 = scmp.lt.s32.totalorder %s573_s28, %s567_s11 }
  0x5d   : > { %441 = vmatprep.subr.bf16.mxu0 %v643_v0 }
  0x5e   : > { %p570_p8 = pneg %p569_p6  ;;  %p576_p3 = por %p575_p13, %p574_p10 }
  0x60   : > { %443 = vmatpush3.bf16.msra.mxu0 %v442_v10  ;;  %p577_p7 = pnand %p576_p3, %p570_p8 }
  0x61   : > { %444 = vmatprep.subr.bf16.mxu0 %v643_v0 }
  0x64   : > { %446 = vmatpush3.bf16.msra.mxu0 %v445_v13 }
  0x67   : > { %433 = vmatmul.mubr.msk.f32.vlgmr.msra.gmra.mrb[0].mxu0 %vm217_vm1, %v201_v14 }
 0x13a   : > { %v287_v16 = vpop.f32.mrb[0].mxu0 }
 0x13b   : > { %v288_v17 = vadd.f32 %v401_v15, %v287_v16  ;;  %v434_v18 = vpop.f32.mrb[1].mxu0 }
 0x13d   : > { %v291_v19 = vadd.f32 3.0, %v288_v17 }
 0x13f   : > { %v292_v20 = vmax.f32 %v291_v19, 0.0 }
 0x141   : > { %v293_v21 = vmin.f32 %v292_v20, 6.0 }
 0x143   : > { %v294_v22 = vmul.f32 %v293_v21, %v288_v17 }
 0x145   : > { %v295_v23 = vmul.f32 0.16666667, %v294_v22 }
 0x147   : > { %296 = vst [vmem:[%s200_s25] sm:$0xff] %v295_v23 }
 0x148   : > { %580 = shalt.err (!%p577_p7)
}
 0x149   : > { %s581_s29 = scalar_lea.hbm %s826_s9, 128  ;;  %s585_s22 = scalar_lea.hbm %s873_s3, 256 }
 0x14a   : > { %p582_p9 = scmp.ne.s32.totalorder %s826_s9, %s581_s29  ;;  %p586_p0 = scmp.lt.u32.totalorder %s826_s9, %s873_s3 }
 0x14b   : > { %p587_p11 = scmp.lt.u32.totalorder %s585_s22, %s581_s29  ;;  %p589_p4 = scmp.lt.u32.totalorder %s581_s29, %s826_s9 }
 0x14c   : > { %p583_p2 = pnand %p582_p9, %p758_p12 }
 0x14d   : > { %p588_p1 = por %p587_p11, %p586_p0 }
 0x14e   : > { %p584_p5 = pneg %p583_p2 }
 0x14f   : > { %p590_p6 = por %p589_p4, %p588_p1 }
 0x151   : > { %p591_p8 = pnand %p590_p6, %p584_p5 }
 0x153   : > { %594 = shalt.err (!%p591_p8)
}
 0x154   : > { %453 = dma.vmem_to_hbm [thread:$0]  (%p758_p12), %s828_s26, 128, %s826_s9, %s298_s10  }
 0x155 PF: > { %s323_s18 = sand.u32 1, %s625_s12   ;;  %p888_p10 = scmp.ne.s32.totalorder %s878_s19, 0 }
 0x156   : > { %p889_p13 = scmp.ge.s32.totalorder %s637_s15, 2  ;;  %s324_s20 = scalar_lea.sflag [#allocation4], %s323_s18 }
 0x158   : > { %p464_p3 = pnand %p889_p13, %p888_p10 }
 0x15a   : > { %620 = dma.done.wait (!%p464_p3), %s324_s20, 128  }
 0x15b   : > { %622 = vsyncadd (!%p464_p3), %s324_s20, 4294967168  ;;  %p17_p7 = scmp.ge.s32.totalorder %s723_s24, 4   ;;  %s890_s12 = smov %s629_s13 }
 0x15c   : > { %s891_s13 = smov %s633_s14  ;;  %s892_s14 = smov %s754_s17 }
 0x15d   : > { %s893_s15 = smov %s723_s24  ;;  %19 = sbr.rel (!%p17_p7) target bundleno = 6 (0x6), region = 81 }
 0x164   :  { %329 = vsyncpa [#allocation3], 1 }
 0x165   :  { %331 = vsyncpa [#allocation3 + $0x1], 1 }
 0x166   :  { %332 = vsyncpa [#allocation6], 1 }
 0x167   :  { %333 = vsyncpa [#allocation4], 1 }
 0x168   :  { %335 = vsyncpa [#allocation4 + $0x1], 1 }

</bundles_post_ra>
